<compile_context>
chip_gen: v6e
topology: v6e:2x2x1
jax: 0.10.0
libtpu: 0.0.40
codegen_flags: <defaults>
</compile_context>

<pallas_src>
import functools

import jax
import jax.numpy as jnp
from jax import lax
from jax.experimental import pallas as pl
from jax.experimental.pallas import tpu as pltpu


_VMEM_LIMIT_BYTES = 48 * 1024 * 1024   # scoped-VMEM limit, safe on v5e/v6e/v7x
_DEFAULT_BLOCK_BUDGET = 36 * 1024 * 1024


def _round_up(v, m):
    return ((v + m - 1) // m) * m


# ---------------------------------------------------------------------------
# Fused single-pass kernel: one (TB, C, HW) block per grid step.
# ---------------------------------------------------------------------------
def _se_fused_kernel(x_ref, w1_ref, b1_ref, w2_ref, b2_ref, o_ref, *, inv_hw):
    x = x_ref[...]                                              # (TB, C, HW)

    # Squeeze: global average pool.  The f32 upcast is fused into the reduce
    # (no materialized f32 copy of the block); divide replaced by * (1/HW).
    y = jnp.sum(x, axis=-1, dtype=jnp.float32) * inv_hw         # (TB, C)

    # Excitation: fc1 -> ReLU -> fc2 (weights pre-transposed to (in, out)).
    h = jnp.maximum(
        jnp.dot(y, w1_ref[...], preferred_element_type=jnp.float32) + b1_ref[...],
        0.0)
    s = jnp.dot(h, w2_ref[...], preferred_element_type=jnp.float32) + b2_ref[...]

    # Gate: clamp(0, 1) (matches torch.clamp in the reference forward).
    s = jnp.clip(s, 0.0, 1.0).astype(x.dtype)
    o_ref[...] = x * s[:, :, None]


# ---------------------------------------------------------------------------
# Fallback pass 1: spatially-chunked pooling + FC -> per-image scales.
# ---------------------------------------------------------------------------
def _se_pool_fc_kernel(x_ref, w1_ref, b1_ref, w2_ref, b2_ref, s_ref, acc_ref,
                       *, inv_hw, hw, thw, need_mask):
    h = pl.program_id(1)

    @pl.when(h == 0)
    def _():
        acc_ref[...] = jnp.zeros_like(acc_ref)

    x = x_ref[...]                                              # (TB, C, THW)
    if need_mask:
        # Last spatial chunk is partial: mask out-of-range lanes so the pooled
        # sum stays exact (Pallas gives undefined data past the array bounds).
        pos = h * thw + lax.broadcasted_iota(jnp.int32, x.shape, 2)
        x = jnp.where(pos < hw, x, jnp.zeros_like(x))
    acc_ref[...] += jnp.sum(x, axis=-1, dtype=jnp.float32)

    @pl.when(h == pl.num_programs(1) - 1)
    def _():
        y = acc_ref[...] * inv_hw                               # (TB, C)
        hid = jnp.maximum(
            jnp.dot(y, w1_ref[...], preferred_element_type=jnp.float32)
            + b1_ref[...], 0.0)
        s = jnp.dot(hid, w2_ref[...], preferred_element_type=jnp.float32) \
            + b2_ref[...]
        s_ref[...] = jnp.clip(s, 0.0, 1.0)[:, :, None]          # (TB, C, 1)


# ---------------------------------------------------------------------------
# Fallback pass 2: broadcast-scale each spatial chunk by the per-image scale.
# ---------------------------------------------------------------------------
def _se_scale_kernel(s_ref, x_ref, o_ref):
    x = x_ref[...]                                              # (TB, C, THW)
    o_ref[...] = x * s_ref[...].astype(x.dtype)                 # s: (TB, C, 1)


# ---------------------------------------------------------------------------
# Wrapper
# ---------------------------------------------------------------------------
def se_layer(x_nchw, w1, b1, w2, b2, *, block_budget_bytes=_DEFAULT_BLOCK_BUDGET):
    """SELayer forward.

    x_nchw: (B, C, H, W).  w1: (hidden, C), b1: (hidden,), w2: (C, hidden),
    b2: (C,)  (same shapes as the PyTorch nn.Linear parameters).
    """
    B, C, H, W = x_nchw.shape
    hidden = w1.shape[0]
    dtype = x_nchw.dtype
    HW = H * W
    inv_hw = float(1.0 / HW)

    x_flat = x_nchw.reshape(B, C, HW)

    # Weights in the activation dtype when bf16 (halves resident VMEM, native
    # MXU feed); otherwise f32.  Pre-transposed to (in, out); biases f32 rows.
    w_dtype = jnp.bfloat16 if jnp.dtype(dtype) == jnp.dtype(jnp.bfloat16) else jnp.float32
    w1_t = jnp.asarray(w1, w_dtype).T                  # (C, hidden)
    w2_t = jnp.asarray(w2, w_dtype).T                  # (hidden, C)
    b1_r = jnp.asarray(b1, jnp.float32).reshape(1, hidden)
    b2_r = jnp.asarray(b2, jnp.float32).reshape(1, C)

    itemsize = jnp.dtype(dtype).itemsize
    w_itemsize = jnp.dtype(w_dtype).itemsize
    lane_hw = _round_up(HW, 128)                       # VMEM tile is lane-rounded
    subl_c = _round_up(C, 8)                           # ... and sublane-rounded
    img_tile_bytes = subl_c * lane_hw * itemsize       # one image's VMEM tile

    # Resident weight/bias blocks still get default double-buffering; count
    # them (padded biases ~4 KiB each buffer) plus 1 MiB misc headroom.
    weights_bytes = 2 * (2 * C * hidden * w_itemsize) + 2 * 2 * 8 * 128 * 4
    avail = block_budget_bytes - weights_bytes - (1 << 20)

    compiler_1d = pltpu.CompilerParams(
        dimension_semantics=("parallel",),
        vmem_limit_bytes=_VMEM_LIMIT_BYTES,
    )

    if avail >= 4 * img_tile_bytes:
        # ---------------- fused single-pass path ----------------
        tb_max = avail // (4 * img_tile_bytes)         # 2 in-bufs + 2 out-bufs
        # Keep >= 2 (>= 4 when possible) batch grid steps: v7x's second
        # TensorCore gets work and input/output DMAs are pipelined.
        if B >= 4:
            cap = B // 4
        elif B >= 2:
            cap = B // 2
        else:
            cap = 1
        TB = int(max(1, min(tb_max, cap, B)))
        grid = (pl.cdiv(B, TB),)                       # TB need not divide B

        kernel = functools.partial(_se_fused_kernel, inv_hw=inv_hw)
        out = pl.pallas_call(
            kernel,
            out_shape=jax.ShapeDtypeStruct((B, C, HW), dtype),
            grid_spec=pltpu.PrefetchScalarGridSpec(
                num_scalar_prefetch=0,
                grid=grid,
                in_specs=[
                    # x: one batch-tile per grid step (pipelined), full HW.
                    pl.BlockSpec((TB, C, HW), lambda b: (b, 0, 0)),
                    # weights/biases: constant index_map -> resident in VMEM.
                    pl.BlockSpec((C, hidden), lambda b: (0, 0)),
                    pl.BlockSpec((1, hidden), lambda b: (0, 0)),
                    pl.BlockSpec((hidden, C), lambda b: (0, 0)),
                    pl.BlockSpec((1, C), lambda b: (0, 0)),
                ],
                out_specs=pl.BlockSpec((TB, C, HW), lambda b: (b, 0, 0)),
            ),
            compiler_params=compiler_1d,
        )(x_flat, w1_t, b1_r, w2_t, b2_r)
        return out.reshape(B, C, H, W)

    # ---------------- spatially-chunked two-pass fallback ----------------
    # A single (1, C, HW) image block does not fit the VMEM budget: stream
    # spatial chunks of one image at a time.
    TB = 1
    thw_elems = max(1, avail // (4 * subl_c * itemsize))
    THW = max(128, (thw_elems // 128) * 128)           # lane-aligned chunk
    THW = min(THW, lane_hw)
    n_hw = pl.cdiv(HW, THW)
    need_mask = (HW % THW) != 0

    compiler_2d_arb = pltpu.CompilerParams(
        dimension_semantics=("parallel", "arbitrary"),
        vmem_limit_bytes=_VMEM_LIMIT_BYTES,
    )
    compiler_2d_par = pltpu.CompilerParams(
        dimension_semantics=("parallel", "parallel"),
        vmem_limit_bytes=_VMEM_LIMIT_BYTES,
    )

    pool_kernel = functools.partial(
        _se_pool_fc_kernel, inv_hw=inv_hw, hw=HW, thw=THW, need_mask=need_mask)

    # Pass 1: pooled sums accumulated across HW chunks, FC at the last chunk.
    scales = pl.pallas_call(
        pool_kernel,
        out_shape=jax.ShapeDtypeStruct((B, C, 1), jnp.float32),
        grid_spec=pltpu.PrefetchScalarGridSpec(
            num_scalar_prefetch=0,
            grid=(B, n_hw),
            in_specs=[
                pl.BlockSpec((TB, C, THW), lambda b, h: (b, 0, h)),
                pl.BlockSpec((C, hidden), lambda b, h: (0, 0)),
                pl.BlockSpec((1, hidden), lambda b, h: (0, 0)),
                pl.BlockSpec((hidden, C), lambda b, h: (0, 0)),
                pl.BlockSpec((1, C), lambda b, h: (0, 0)),
            ],
            out_specs=pl.BlockSpec((TB, C, 1), lambda b, h: (b, 0, 0)),
            scratch_shapes=[pltpu.VMEM((TB, C), jnp.float32)],
        ),
        compiler_params=compiler_2d_arb,
    )(x_flat, w1_t, b1_r, w2_t, b2_r)

    # Pass 2: stream x again and scale each chunk by the per-image gate.
    out = pl.pallas_call(
        _se_scale_kernel,
        out_shape=jax.ShapeDtypeStruct((B, C, HW), dtype),
        grid_spec=pltpu.PrefetchScalarGridSpec(
            num_scalar_prefetch=0,
            grid=(B, n_hw),
            in_specs=[
                pl.BlockSpec((TB, C, 1), lambda b, h: (b, 0, 0)),
                pl.BlockSpec((TB, C, THW), lambda b, h: (b, 0, h)),
            ],
            out_specs=pl.BlockSpec((TB, C, THW), lambda b, h: (b, 0, h)),
        ),
        compiler_params=compiler_2d_par,
    )(scales, x_flat)
    return out.reshape(B, C, H, W)


# ---------------------------------------------------------------------------
# Pure-JAX reference matching the PyTorch forward.
# ---------------------------------------------------------------------------
def _reference(x, w1, b1, w2, b2):
    y = jnp.mean(x, axis=(2, 3))                       # (B, C)
    y = jnp.maximum(y @ w1.T + b1, 0.0)                # (B, hidden)
    y = y @ w2.T + b2                                  # (B, C)
    y = jnp.clip(y, 0.0, 1.0)
    return x * y[:, :, None, None]


if __name__ == "__main__":
    B, C, H, W = 2, 32, 14, 14                         # HW=196: not a 128-multiple
    reduction = 4
    hidden = C // reduction

    key = jax.random.PRNGKey(0)
    kx, k1, k2, k3, k4 = jax.random.split(key, 5)
    x = jax.random.normal(kx, (B, C, H, W), dtype=jnp.float32)

    # Deterministic params, shapes match nn.Linear(channel, channel//r) and
    # nn.Linear(channel//r, channel).
    w1 = jax.random.normal(k1, (hidden, C), dtype=jnp.float32) * 0.3
    b1 = jax.random.normal(k2, (hidden,), dtype=jnp.float32) * 0.1
    w2 = jax.random.normal(k3, (C, hidden), dtype=jnp.float32) * 0.3
    b2 = jax.random.normal(k4, (C,), dtype=jnp.float32) * 0.1

    ref = _reference(x, w1, b1, w2, b2)

    # Primary (fused single-pass) path.
    out = jax.block_until_ready(se_layer(x, w1, b1, w2, b2))
    assert out.shape == (B, C, H, W)
    assert jnp.allclose(out, ref, atol=1e-4, rtol=1e-4), "fused path mismatch"

    # Spatially-chunked two-pass fallback, forced via a tiny block budget
    # (exercises multi-chunk f32 accumulation + partial-chunk masking).
    out_fb = jax.block_until_ready(
        se_layer(x, w1, b1, w2, b2, block_budget_bytes=1_100_000))
    assert out_fb.shape == (B, C, H, W)
    assert jnp.allclose(out_fb, ref, atol=1e-4, rtol=1e-4), "fallback path mismatch"

    print("KERNEL_OK")
</pallas_src>

<mosaic_0001>
module attributes {stable_mosaic.version = 11 : i64} {
  func.func @_se_fused_kernel(%arg0: i32, %arg1: memref<1x32x196xf32, #tpu.memory_space<vmem>>, %arg2: memref<32x8xf32, #tpu.memory_space<vmem>>, %arg3: memref<1x8xf32, #tpu.memory_space<vmem>>, %arg4: memref<8x32xf32, #tpu.memory_space<vmem>>, %arg5: memref<1x32xf32, #tpu.memory_space<vmem>>, %arg6: memref<1x32x196xf32, #tpu.memory_space<vmem>>) attributes {dimension_semantics = [#tpu.dimension_semantics<parallel>], iteration_bounds = array<i64: 2>, scalar_prefetch = 0 : i64, scratch_operands = 0 : i64, tpu.core_type = #tpu.core_type<tc>, window_params = [{transform_indices = @transform_0, window_bounds = array<i64: 1, 32, 196>}, {pipeline_mode = #tpu.pipeline_mode<synchronous>, transform_indices = @transform_1, window_bounds = array<i64: 32, 8>}, {pipeline_mode = #tpu.pipeline_mode<synchronous>, transform_indices = @transform_2, window_bounds = array<i64: 1, 8>}, {pipeline_mode = #tpu.pipeline_mode<synchronous>, transform_indices = @transform_3, window_bounds = array<i64: 8, 32>}, {pipeline_mode = #tpu.pipeline_mode<synchronous>, transform_indices = @transform_4, window_bounds = array<i64: 1, 32>}, {transform_indices = @transform_5, window_bounds = array<i64: 1, 32, 196>}]} {
    %c0 = arith.constant 0 : index
    %c0_0 = arith.constant 0 : index
    %c0_1 = arith.constant 0 : index
    %0 = vector.load %arg1[%c0, %c0_0, %c0_1] : memref<1x32x196xf32, #tpu.memory_space<vmem>>, vector<1x32x196xf32>
    %cst = arith.constant dense<0.000000e+00> : vector<1x32xf32>
    %1 = vector.multi_reduction <add>, %0, %cst [2] : vector<1x32x196xf32> to vector<1x32xf32>
    %cst_2 = arith.constant 0.00510204071 : f32
    %2 = vector.broadcast %cst_2 : f32 to vector<1x32xf32>
    %3 = arith.mulf %1, %2 : vector<1x32xf32>
    %c0_3 = arith.constant 0 : index
    %c0_4 = arith.constant 0 : index
    %4 = vector.load %arg2[%c0_3, %c0_4] : memref<32x8xf32, #tpu.memory_space<vmem>>, vector<32x8xf32>
    %cst_5 = arith.constant dense<0.000000e+00> : vector<1x8xf32>
    %5 = tpu.matmul %3, %4, %cst_5 {dimension_numbers = #tpu.dot_dimension_numbers<[1], [0], [0], [1], [0, 0, 1, 1], [], []>} : vector<1x32xf32>, vector<32x8xf32>, vector<1x8xf32> -> vector<1x8xf32>
    %c0_6 = arith.constant 0 : index
    %c0_7 = arith.constant 0 : index
    %6 = vector.load %arg3[%c0_6, %c0_7] : memref<1x8xf32, #tpu.memory_space<vmem>>, vector<1x8xf32>
    %7 = arith.addf %5, %6 : vector<1x8xf32>
    %cst_8 = arith.constant 0.000000e+00 : f32
    %8 = vector.broadcast %cst_8 : f32 to vector<1x8xf32>
    %9 = arith.maximumf %7, %8 : vector<1x8xf32>
    %c0_9 = arith.constant 0 : index
    %c0_10 = arith.constant 0 : index
    %10 = vector.load %arg4[%c0_9, %c0_10] : memref<8x32xf32, #tpu.memory_space<vmem>>, vector<8x32xf32>
    %cst_11 = arith.constant dense<0.000000e+00> : vector<1x32xf32>
    %11 = tpu.matmul %9, %10, %cst_11 {dimension_numbers = #tpu.dot_dimension_numbers<[1], [0], [0], [1], [0, 0, 1, 1], [], []>} : vector<1x8xf32>, vector<8x32xf32>, vector<1x32xf32> -> vector<1x32xf32>
    %c0_12 = arith.constant 0 : index
    %c0_13 = arith.constant 0 : index
    %12 = vector.load %arg5[%c0_12, %c0_13] : memref<1x32xf32, #tpu.memory_space<vmem>>, vector<1x32xf32>
    %13 = arith.addf %11, %12 : vector<1x32xf32>
    %cst_14 = arith.constant 0.000000e+00 : f32
    %cst_15 = arith.constant 1.000000e+00 : f32
    %14 = vector.broadcast %cst_14 : f32 to vector<1x32xf32>
    %15 = arith.maximumf %14, %13 : vector<1x32xf32>
    %16 = vector.broadcast %cst_15 : f32 to vector<1x32xf32>
    %17 = arith.minimumf %16, %15 : vector<1x32xf32>
    %18 = vector.shape_cast %17 : vector<1x32xf32> to vector<1x32x1xf32>
    %19 = vector.broadcast %18 : vector<1x32x1xf32> to vector<1x32x196xf32>
    %20 = arith.mulf %0, %19 : vector<1x32x196xf32>
    %c0_16 = arith.constant 0 : index
    %c0_17 = arith.constant 0 : index
    %c0_18 = arith.constant 0 : index
    %21 = vector.load %arg6[%c0_16, %c0_17, %c0_18] : memref<1x32x196xf32, #tpu.memory_space<vmem>>, vector<1x32x196xf32>
    tpu.vector_store %arg6[%c0_16, %c0_17, %c0_18], %20 {strides = array<i32>} : memref<1x32x196xf32, #tpu.memory_space<vmem>>, vector<1x32x196xf32>,
    return
  }
  func.func @transform_0(%arg0: i32) -> (i32, i32, i32) {
    %c0_i32 = arith.constant 0 : i32
    %c0_i32_0 = arith.constant 0 : i32
    %c0_i32_1 = arith.constant 0 : i32
    return %arg0, %c0_i32, %c0_i32_0 : i32, i32, i32
  }
  func.func @transform_1(%arg0: i32) -> (i32, i32) {
    %c0_i32 = arith.constant 0 : i32
    %c0_i32_0 = arith.constant 0 : i32
    %c0_i32_1 = arith.constant 0 : i32
    return %c0_i32, %c0_i32_0 : i32, i32
  }
  func.func @transform_2(%arg0: i32) -> (i32, i32) {
    %c0_i32 = arith.constant 0 : i32
    %c0_i32_0 = arith.constant 0 : i32
    %c0_i32_1 = arith.constant 0 : i32
    return %c0_i32, %c0_i32_0 : i32, i32
  }
  func.func @transform_3(%arg0: i32) -> (i32, i32) {
    %c0_i32 = arith.constant 0 : i32
    %c0_i32_0 = arith.constant 0 : i32
    %c0_i32_1 = arith.constant 0 : i32
    return %c0_i32, %c0_i32_0 : i32, i32
  }
  func.func @transform_4(%arg0: i32) -> (i32, i32) {
    %c0_i32 = arith.constant 0 : i32
    %c0_i32_0 = arith.constant 0 : i32
    %c0_i32_1 = arith.constant 0 : i32
    return %c0_i32, %c0_i32_0 : i32, i32
  }
  func.func @transform_5(%arg0: i32) -> (i32, i32, i32) {
    %c0_i32 = arith.constant 0 : i32
    %c0_i32_0 = arith.constant 0 : i32
    %c0_i32_1 = arith.constant 0 : i32
    return %arg0, %c0_i32, %c0_i32_0 : i32, i32, i32
  }
}

</mosaic_0001>

<bundles_post_ra>
// kernel: tpu_custom_call.1
= control target key start
LH: loop header
LB: loop body
LE: loop exit
PB: predicated region body
PF: predicated region fallthrough
CT: control target
= control target key end

     0   :  { %10 = vsyncpa [#allocation3], 0  ;;  %s1026_s0 = inlined_call_operand.hbm [shape: f32[2,32,196], index: 0, kind: input, shape index: {}]   ;;  %s1027_s1 = inlined_call_operand.vmem [shape: f32[32,8], index: 1, kind: input, shape index: {}]   ;;  %s1028_s2 = inlined_call_operand.vmem [shape: f32[1,8], index: 2, kind: input, shape index: {}]   ;;  %s1029_s3 = inlined_call_operand.vmem [shape: f32[8,32], index: 3, kind: input, shape index: {}]   ;;  %s1030_s4 = inlined_call_operand.vmem [shape: f32[1,32], index: 4, kind: input, shape index: {}]   ;;  %s1031_s5 = inlined_call_operand.hbm [shape: f32[2,32,196], index: 5, kind: output, shape index: {}]  }
   0x1   :  { %12 = vsyncpa [#allocation3 + $0x1], 0 }
   0x2   :  { %13 = vsyncpa [#allocation4], 0 }
   0x3   :  { %15 = vsyncpa [#allocation4 + $0x1], 0  ;;  %s807_s18 = smov 0   ;;  %s809_s19 = smov 0  }
   0x4   :  { %s811_s20 = smov 0   ;;  %s813_s21 = smov 0  }
   0x5 LB: > { %s828_s22 = sadd.s32 4294967295, %s767_s21   ;;  %s582_s23 = sadd.s32 4294967294, %s767_s21   ;;  %s767_s21 = sphi %s813_s21, %s1046_s21   ;;  %s763_s20 = sphi %s811_s20, %s1045_s20   ;;  %s759_s19 = sphi %s809_s19, %s1044_s19   ;;  %s755_s18 = sphi %s807_s18, %s1043_s18  }
   0x6   : > { %s832_s24 = sadd.s32 1, %s767_s21   ;;  %s28_s25 = sadd.s32 1, %s763_s20 }
   0x7   : > { %s25_s26 = ssub.s32 %s767_s21, %s832_s24  ;;  %p35_p0 = scmp.ne.s32.totalorder %s763_s20, %s759_s19 }
   0x8   : > { %p26_p1 = scmp.eq.s32.totalorder %s25_s26, 0  ;;  %p36_p2 = scmp.eq.s32.totalorder %s767_s21, 0 }
   0x9   : > { %p41_p3 = scmp.ne.s32.totalorder %s759_s19, %s755_s18  ;;  %p42_p4 = scmp.eq.s32.totalorder %s828_s22, 0 }
   0xa   : > { %s844_s27 = scalar_select %p26_p1, %s763_s20, %s28_s25  }
   0xb   : > { %p846_p5 = por %p36_p2, %p35_p0  ;;  %p850_p6 = por %p42_p4, %p41_p3 }
   0xc   : > { %p149_p7 = scmp.eq.s32.totalorder %s828_s22, 1  ;;  %p155_p8 = scmp.eq.s32.totalorder %s582_s23, 1 }
   0xd   : > { %s1035_s29 = scalar_select %p850_p6, 1, 0 }
   0xe   : > { %p635_p10 = scmp.lt.s32.totalorder %s767_s21, 2  ;;  %p857_p11 = por %p149_p7, %p35_p0 }
   0xf   : > { %p861_p12 = por %p155_p8, %p41_p3  ;;  %s187_s7 = sand.u32 1, %s763_s20  }
  0x10   : > { %s1036_s30 = scalar_select %p857_p11, 1, 0 }
  0x11   : > { %s1037_s6 = scalar_select %p861_p12, 1, 0 }
  0x12   : > { %s598_s8 = sshll.u32 %s767_s21, 10  ;;  %s585_s9 = sshll.u32 %s187_s7, 6 }
  0x13   : > { %s870_s12 = scalar_lea.hbm %s1026_s0, %s598_s8  ;;  %s191_s13 = scalar_lea.vmem [#allocation2], %s585_s9 }
  0x14   : > { %s198_s14 = sshll.u32 %s191_s13, 4  ;;  %p874_p13 = pnand %p635_p10, %p846_p5  ;;  %s878_s14 = int_to_ptr.vmem [resolvable:$true] %s198_s14 }
  0x15   : > { %s880_s16 = scalar_lea.sflag [#allocation3], %s187_s7  ;;  %s675_s17 = scalar_lea.hbm %s870_s12, 1024 }
  0x16   : > { %p676_p0 = scmp.ne.s32.totalorder %s870_s12, %s675_s17  ;;  %p677_p1 = pneg %p874_p13 }
  0x17   : > { %s680_s26 = scalar_lea.hbm %s1026_s0, 2048  ;;  %p681_p4 = scmp.lt.s32.totalorder %s870_s12, %s1026_s0 }
  0x18   : > { %p678_p2 = pnand %p677_p1, %p676_p0  ;;  %p682_p5 = scmp.lt.s32.totalorder %s680_s26, %s675_s17 }
  0x1a   : > { %p679_p3 = pneg %p678_p2  ;;  %p683_p7 = por %p682_p5, %p681_p4 }
  0x1c   : > { %p684_p8 = pnand %p683_p7, %p679_p3 }
  0x1e   : > { %687 = shalt.err (!%p684_p8)
}
  0x1f   : > { %s688_s7 = scalar_lea.vmem %s878_s14, 1024  ;;  %s769_s9 = smov [#allocation2]  }
  0x20   : > { %p689_p10 = scmp.ne.s32.totalorder %s878_s14, %s688_s7  ;;  %s693_s10 = sshll.u32 %s769_s9, 4  ;;  %s694_s10 = int_to_ptr.vmem [resolvable:$false] %s693_s10 }
  0x21   : > { %s695_s11 = scalar_lea.vmem %s694_s10, 2048  ;;  %p696_p2 = scmp.lt.s32.totalorder %s878_s14, %s694_s10 }
  0x22   : > { %p691_p9 = pnand %p689_p10, %p677_p1  ;;  %p697_p12 = scmp.lt.s32.totalorder %s695_s11, %s688_s7 }
  0x24   : > { %p692_p0 = pneg %p691_p9  ;;  %p698_p11 = por %p697_p12, %p696_p2 }
  0x26   : > { %p699_p6 = pnand %p698_p11, %p692_p0 }
  0x28   : > { %702 = shalt.err (!%p699_p6)
}
  0x29   : > { %s770_s13 = smov 256   ;;  %s771_s17 = smov 16  }
  0x2a   : > { %630 = dma.hbm_to_vmem [thread:$0]  (!%p874_p13), %s870_s12, 1024, %s878_s14, %s880_s16, %s770_s13, %s770_s13, %s771_s17  }
  0x2b   : > { %p588_p9 = scmp.ge.s32.totalorder %s767_s21, 1  ;;  %p206_p1 = scmp.lt.s32.totalorder %s767_s21, 3 }
  0x2d   : > { %p207_p3 = pnand %p588_p9, %p206_p1 }
  0x2e   : > { %s904_s23 = sand.u32 (!%p207_p3), 1, %s759_s19   ;;  %p1039_p6 = scmp.ne.s32.totalorder (!%p207_p3), %s1035_s29, 0 }
  0x2f   : > { %210 = sbr.rel (%p207_p3) target bundleno = 743 (0x2e7), region = 40  ;;  %s589_s25 = sshll.u32 (!%p207_p3), %s904_s23, 6 }
  0x30   : > { %s213_s26 = scalar_lea.sflag (!%p207_p3), [#allocation3], %s904_s23  ;;  %s216_s28 = scalar_lea.vmem (!%p207_p3), [#allocation2], %s589_s25 }
  0x34   : > { %746 = dma.done.wait (%p1039_p6), %s213_s26, 1024  }
  0x35   : > { %748 = vsyncadd (%p1039_p6), %s213_s26, 4294966272  ;;  %vm251_vm0 = vcmask 556032   ;;  %v914_v0 = vld [vmem:[%s216_s28] sm:$0xff]  ;;  %v916_v1 = vld [vmem:[%s216_s28 + $0x8] sm:$0xff]  ;;  %v772_v16 = vmov 0.0   ;;  %vm773_vm1 = vmmov 0   ;;  %v281_v21 = vlaneseq }
  0x36   : > { %v918_v2 = vld [vmem:[%s216_s28 + $0x20] sm:$0xff]  ;;  %v252_v3 = vsel %vm251_vm0, %v916_v1, 0.0  ;;  %v922_v4 = vld [vmem:[%s216_s28 + $0x28] sm:$0xff]  ;;  %v924_v5 = vld [vmem:[%s216_s28 + $0x10] sm:$0xff]  ;;  %607 = vmatprep.subr.mxu0 %v772_v16  ;;  %618 = vmatprep.subr.mxu1 %v772_v16  ;;  %vm292_vm2 = vcmask 130112   ;;  %vm299_vm3 = vcmask 195712  }
  0x37   : > { %v926_v6 = vld [vmem:[%s216_s28 + $0x18] sm:$0xff]  ;;  %v253_v7 = vadd.f32 %v252_v3, %v914_v0  ;;  %v260_v8 = vsel %vm251_vm0, %v922_v4, 0.0  ;;  %v933_v10 = vld [vmem:[%s216_s28 + $0x30] sm:$0xff]  ;;  %v273_v19 = vld [vmem:[%s1027_s1 + $0x8] sm:$0xff]  ;;  %615 = vmatprep.mubr.msk.f32.mxu0 %vm773_vm1, %v772_v16  ;;  %620 = vmatprep.mubr.msk.f32.mxu1 %vm773_vm1, %v772_v16  ;;  %v282_v22 = vand.u32 127, %v281_v21  ;;  %v284_v23 = vshrl.u32 %v281_v21, 7 }
  0x38   : > { %v256_v9 = vsel %vm251_vm0, %v926_v6, 0.0  ;;  %v935_v11 = vld [vmem:[%s216_s28 + $0x38] sm:$0xff]  ;;  %v261_v12 = vadd.f32 %v260_v8, %v918_v2  ;;  %v274_v18 = vld [vmem:[%s1027_s1 + $0x10] sm:$0xff]  ;;  %v272_v20 = vld [vmem:[%s1027_s1] sm:$0xff]  ;;  %vm306_vm4 = vcmask 261312   ;;  %vm308_vm5 = vcmask 261120  }
  0x39   : > { %v264_v13 = vsel %vm251_vm0, %v935_v11, 0.0  ;;  %254 = vadd.xlane.f32.xlu0 %v253_v7  ;;  %v257_v14 = vadd.f32 %v256_v9, %v924_v5  ;;  %v275_v17 = vld [vmem:[%s1027_s1 + $0x18] sm:$0xff]  ;;  %v287_v24 = vadd.s32 4294967288, %v282_v22  ;;  %v294_v26 = vadd.s32 4294967280, %v282_v22  ;;  %v382_v46 = vld [vmem:[%s1029_s3] sm:$0xff]  ;;  %s242_s29 = scalar_lea.vmem [#allocation5], %s589_s25 }
  0x3a   : > { %262 = vadd.xlane.f32.xlu1 %v261_v12  ;;  %v265_v15 = vadd.f32 %v264_v13, %v933_v10  ;;  %608 = vmatpush3.msra.mxu0 %v275_v17  ;;  %v301_v27 = vadd.s32 4294967272, %v282_v22  ;;  %v285_v29 = vsub.s32 %v282_v22, %v284_v23  ;;  %v276_v47 = vld [vmem:[%s1028_s2] sm:$0x1]  ;;  %vm384_vm6 = vcmask 64512   ;;  %s509_s12 = sshll.u32 %s242_s29, 4  ;;  %s599_s14 = sshll.u32 %s828_s22, 10  ;;  %s974_s12 = int_to_ptr.vmem [resolvable:$true] %s509_s12 }
  0x3b   : > { %609 = vmatprep.subr.mxu0 %v772_v16  ;;  %v290_v31 = vsub.s32 %v287_v24, %v284_v23  ;;  %v297_v32 = vsub.s32 %v294_v26, %v284_v23  ;;  %619 = vmatpush3.msra.mxu1 %v382_v46  ;;  %v383_v52 = vld [vmem:[%s1030_s4] sm:$0x1]  ;;  %v462_v57 = vsub.s32 0, %v284_v23  ;;  %s980_s16 = scalar_lea.hbm %s1031_s5, %s599_s14  ;;  %s496_s22 = scalar_lea.sflag [#allocation4], %s904_s23 }
  0x3c   : > { %610 = vmatpush3.msra.mxu0 %v274_v18  ;;  %v304_v35 = vsub.s32 %v301_v27, %v284_v23  ;;  %s703_s8 = scalar_lea.vmem %s974_s12, 1024  ;;  %p1040_p12 = scmp.ne.s32.totalorder %s1036_s30, 0 }
  0x3d   : > { %258 = vadd.xlane.f32.xlu0 %v257_v14  ;;  %611 = vmatprep.subr.mxu0 %v772_v16  ;;  %p704_p11 = scmp.ne.s32.totalorder %s974_s12, %s703_s8  ;;  %s774_s7 = smov [#allocation5]  }
  0x3e   : > { %266 = vadd.xlane.f32.xlu1 %v265_v15  ;;  %612 = vmatpush3.msra.mxu0 %v273_v19  ;;  %s707_s9 = sshll.u32 %s774_s7, 4  ;;  %s708_s9 = int_to_ptr.vmem [resolvable:$false] %s707_s9 }
  0x3f   : > { %613 = vmatprep.subr.mxu0 %v772_v16  ;;  %p705_p13 = pnand %p704_p11, %p1040_p12  ;;  %s709_s10 = scalar_lea.vmem %s708_s9, 2048 }
  0x40   : > { %614 = vmatpush3.msra.mxu0 %v272_v20  ;;  %p710_p5 = scmp.lt.s32.totalorder %s974_s12, %s708_s9  ;;  %p711_p7 = scmp.lt.s32.totalorder %s709_s10, %s703_s8 }
  0x41   : > { %p706_p4 = pneg %p705_p13 }
  0x42   : > { %p712_p8 = por %p711_p7, %p710_p5 }
  0x44   : > { %p713_p10 = pnand %p712_p8, %p706_p4 }
  0xc2   : > { %v255_v25 = vpop.xlane.xlu0 %254 }
  0xc3   : > { %v263_v28 = vpop.xlane.xlu1 %262  ;;  %v268_v30 = vmul.f32 0.0051020407, %v255_v25 }
  0xc4   : > { %v270_v33 = vmul.f32 0.0051020407, %v263_v28 }
  0xc5   : > { %v286_v39 = vrot.slane %v268_v30, %v285_v29 }
  0xc6   : > { %v259_v34 = vpop.xlane.xlu0 %258  ;;  %v298_v41 = vrot.slane %v270_v33, %v297_v32 }
  0xc7   : > { %v269_v36 = vmul.f32 0.0051020407, %v259_v34  ;;  %v267_v37 = vpop.xlane.xlu1 %266 }
  0xc8   : > { %v271_v38 = vmul.f32 0.0051020407, %v267_v37 }
  0xc9   : > { %v291_v40 = vrot.slane %v269_v36, %v290_v31 }
  0xca   : > { %v305_v42 = vrot.slane %v271_v38, %v304_v35 }
  0xcb   : > { %v293_v43 = vsel %vm292_vm2, %v291_v40, %v286_v39 }
  0xcc   : > { %v300_v44 = vsel %vm299_vm3, %v298_v41, %v293_v43 }
  0xcd   : > { %v307_v45 = vsel %vm306_vm4, %v305_v42, %v300_v44 }
  0xce   : > { %616 = vmatmul.mubr.msk.f32.vlgmr.msra.gmra.mxu0 %vm308_vm5, %v307_v45 }
 0x18e   : > { %v377_v48 = vpop.f32.mrf.mxu0 }
 0x18f   : > { %v378_v49 = vadd.f32 %v377_v48, %v276_v47 }
 0x190   : > { %v617_v50 = vpop.f32.mrf.mxu0 }
 0x191   : > { %v381_v51 = vmax.f32 %v378_v49, 0.0 }
 0x193   : > { %621 = vmatmul.mubr.msk.f32.vlgmr.msra.gmra.mxu1 %vm384_vm6, %v381_v51 }
 0x253   : > { %v454_v53 = vpop.f32.mrf.mxu1 }
 0x254   : > { %v455_v54 = vadd.f32 %v454_v53, %v383_v52 }
 0x255   : > { %v622_v55 = vpop.f32.mrf.mxu1 }
 0x256   : > { %v458_v56 = vmax.f32 %v455_v54, 0.0 }
 0x258   : > { %v459_v58 = vmin.f32 %v458_v56, 1.0 }
 0x25a   : > { %v463_v59 = vrot.slane %v459_v58, %v462_v57 }
 0x25c   : > { %469 = vbcast.lane.b32.xlu1 %v463_v59, 264  ;;  %465 = vbcast.lane.b32.xlu0 %v463_v59, 256 }
 0x260   : > { %473 = vbcast.lane.b32.xlu1 %v463_v59, 272 }
 0x264   : > { %477 = vbcast.lane.b32.xlu1 %v463_v59, 280 }
 0x2ce   : > { %v470_v60 = vpop.permute.xlu1 %469  ;;  %v466_v61 = vpop.permute.xlu0 %465 }
 0x2cf   : > { %v481_v62 = vmul.f32 %v470_v60, %v924_v5  ;;  %v482_v63 = vmul.f32 %v470_v60, %v926_v6  ;;  %v479_v3 = vmul.f32 %v466_v61, %v914_v0  ;;  %v480_v7 = vmul.f32 %v466_v61, %v916_v1 }
 0x2d1   : > { %489 = vst [vmem:[%s242_s29 + $0x10] sm:$0xff] %v481_v62  ;;  %490 = vst.msk [vmem:[%s242_s29 + $0x18] sm:$0xff] %vm251_vm0, %v482_v63 }
 0x2d2   : > { %487 = vst [vmem:[%s242_s29] sm:$0xff] %v479_v3  ;;  %488 = vst.msk [vmem:[%s242_s29 + $0x8] sm:$0xff] %vm251_vm0, %v480_v7  ;;  %v474_v8 = vpop.permute.xlu1 %473 }
 0x2d3   : > { %v483_v5 = vmul.f32 %v474_v8, %v918_v2  ;;  %v484_v6 = vmul.f32 %v474_v8, %v922_v4 }
 0x2d5   : > { %491 = vst [vmem:[%s242_s29 + $0x20] sm:$0xff] %v483_v5  ;;  %492 = vst.msk [vmem:[%s242_s29 + $0x28] sm:$0xff] %vm251_vm0, %v484_v6 }
 0x2d6   : > { %v478_v0 = vpop.permute.xlu1 %477 }
 0x2d7   : > { %v485_v1 = vmul.f32 %v478_v0, %v933_v10  ;;  %v486_v2 = vmul.f32 %v478_v0, %v935_v11 }
 0x2d9   : > { %493 = vst [vmem:[%s242_s29 + $0x30] sm:$0xff] %v485_v1  ;;  %494 = vst.msk [vmem:[%s242_s29 + $0x38] sm:$0xff] %vm251_vm0, %v486_v2 }
 0x2da   : > { %716 = shalt.err (!%p713_p10)
}
 0x2db   : > { %s717_s11 = scalar_lea.hbm %s980_s16, 1024  ;;  %s721_s26 = scalar_lea.hbm %s1031_s5, 2048 }
 0x2dc   : > { %p718_p0 = scmp.ne.s32.totalorder %s980_s16, %s717_s11  ;;  %p722_p1 = scmp.lt.s32.totalorder %s980_s16, %s1031_s5 }
 0x2dd   : > { %p723_p3 = scmp.lt.s32.totalorder %s721_s26, %s717_s11 }
 0x2de   : > { %p719_p2 = pnand %p718_p0, %p1040_p12 }
 0x2df   : > { %p724_p6 = por %p723_p3, %p722_p1 }
 0x2e0   : > { %p720_p9 = pneg %p719_p2 }
 0x2e2   : > { %p725_p11 = pnand %p724_p6, %p720_p9 }
 0x2e4   : > { %728 = shalt.err (!%p725_p11)
}
 0x2e5   : > { %s775_s14 = smov 256   ;;  %s776_s25 = smov 16  }
 0x2e6   : > { %625 = dma.vmem_to_hbm [thread:$0]  (%p1040_p12), %s974_s12, 1024, %s980_s16, %s496_s22, %s775_s14, %s775_s14, %s776_s25  }
 0x2e7 PF: > { %s524_s15 = sand.u32 1, %s755_s18   ;;  %p1041_p13 = scmp.ne.s32.totalorder %s1037_s6, 0 }
 0x2e8   : > { %p1042_p4 = scmp.ge.s32.totalorder %s767_s21, 2  ;;  %s525_s8 = scalar_lea.sflag [#allocation4], %s524_s15 }
 0x2ea   : > { %p632_p5 = pnand %p1042_p4, %p1041_p13 }
 0x2ec   : > { %p633_p7 = pneg %p632_p5 }
 0x2ee   : > { %750 = dma.done.wait (%p633_p7), %s525_s8, 1024  }
 0x2ef   : > { %752 = vsyncadd (%p633_p7), %s525_s8, 4294966272  ;;  %p18_p8 = scmp.ge.s32.totalorder %s832_s24, 4   ;;  %s1043_s18 = smov %s759_s19 }
 0x2f0   : > { %s1044_s19 = smov %s763_s20  ;;  %s1045_s20 = smov %s844_s27 }
 0x2f1   : > { %s1046_s21 = smov %s832_s24  ;;  %20 = sbr.rel (!%p18_p8) target bundleno = 5 (0x5), region = 85 }
 0x2f6   :  { %530 = vsyncpa [#allocation3], 1 }
 0x2f7   :  { %532 = vsyncpa [#allocation3 + $0x1], 1 }
 0x2f8   :  { %533 = vsyncpa [#allocation4], 1 }
 0x2f9   :  { %535 = vsyncpa [#allocation4 + $0x1], 1 }

</bundles_post_ra>
